<compile_context>
chip_gen: v7x
topology: tpu7x:2x2x1
jax: 0.10.0
libtpu: 0.0.40
codegen_flags: <defaults>
</compile_context>

<pallas_src>
import numpy as np
import jax
import jax.numpy as jnp
from jax import lax
from jax.experimental import pallas as pl
from jax.experimental.pallas import tpu as pltpu

EPS = 1e-12

_VMEM_TARGET = 12 * 1024 * 1024     # per-grid-step resident bytes; safe on v5e/v6e/v7x scoped VMEM
_VMEM_CAP = 48 * 1024 * 1024        # never ask for more than this (v7x has 64 MiB physical / TC)
_MXU_FLOPS_PER_BYTE = 32.0          # keep the vertical-pass matmul well under the HBM roofline


def _hann_weights_1d(kernel_size: int) -> np.ndarray:
    """torch.hann_window(kernel_size + 2, periodic=False)[1:-1], normalized so the outer product
    of these 1-D taps equals the module's normalized 2-D Hann kernel."""
    m = kernel_size + 2
    n = np.arange(m, dtype=np.float64)
    window = 0.5 * (1.0 - np.cos(2.0 * np.pi * n / (m - 1)))
    window = window[1:-1]
    return window / window.sum()            # k=3 -> [0.25, 0.5, 0.25] (exact in binary)


def _divisors(n: int):
    out = set()
    i = 1
    while i * i <= n:
        if n % i == 0:
            out.add(i)
            out.add(n // i)
        i += 1
    return sorted(out)


def _horizontal_matrix(W: int, Wo: int, w3) -> np.ndarray:
    """(W, Wo): column j holds the 3 Hann taps for output column j (stride 2, zero-pad 1)."""
    m = np.zeros((W, Wo), np.float32)
    for j in range(Wo):
        for d in range(3):
            k = 2 * j - 1 + d
            if 0 <= k < W:
                m[k, j] = w3[d]
    return m


def _vertical_matrix_planes(bc: int, Ho: int, Hp: int, w3) -> np.ndarray:
    """(bc*Ho, bc*Hp): block-diagonal vertical Hann taps for bc stacked whole planes.
    The per-plane top/bottom zero padding is encoded by simply dropping out-of-range taps."""
    m = np.zeros((bc * Ho, bc * Hp), np.float32)
    for b in range(bc):
        for i in range(Ho):
            for d in range(3):
                r = 2 * i - 1 + d
                if 0 <= r < Hp:
                    m[b * Ho + i, b * Hp + r] = w3[d]
    return m


def _vertical_matrix_rows(th: int, w3) -> np.ndarray:
    """(th, 2*th): banded vertical Hann taps for one row block of a single plane.
    The tap on local input row -1 (the halo row) is applied separately in the kernel."""
    m = np.zeros((th, 2 * th), np.float32)
    for i in range(th):
        for d in range(3):
            r = 2 * i - 1 + d
            if r >= 0:
                m[i, r] = w3[d]
    return m


def _footprint(r_in: int, r_out: int, W: int, Wo: int, itemsize: int) -> int:
    """Approximate per-grid-step VMEM bytes (double buffers + tap matrices + f32 temps)."""
    return (2 * r_in * W * itemsize          # x block, double buffered
            + 2 * W * Wo * 4                 # Mh
            + 2 * r_out * r_in * 4           # Mv
            + 2 * r_out * Wo * itemsize      # output block, double buffered
            + r_in * W * 4                   # squared input temp (f32)
            + r_in * Wo * 4                  # horizontal-pass temp (f32)
            + r_out * Wo * 4                 # output temp (f32)
            + 2 * W * 4)                     # halo carry scratch + halo temp


def _plan(nc: int, Hp: int, W: int, Ho: int, Wo: int, itemsize: int):
    """Pick a tiling regime and block size that always fits the VMEM target and keeps the
    vertical matmul subordinate to HBM traffic.  Prefer >=2 grid steps (megacore / pipelining)
    and sublane-aligned (multiple-of-8) block heights."""

    def ok(r_in, r_out):
        fits = _footprint(r_in, r_out, W, Wo, itemsize) <= _VMEM_TARGET
        mxu = 2.0 * r_out * r_in * Wo <= _MXU_FLOPS_PER_BYTE * r_in * W * itemsize
        return fits and mxu

    if nc >= 2:
        # Regime "planes": bc whole planes per step (bc | nc); keep nc // bc >= 2 grid steps.
        cands = [d for d in _divisors(nc) if nc // d >= 2 and ok(d * Hp, d * Ho)]
        if cands:
            bc = max(cands, key=lambda d: (((d * Hp) % 8 == 0) + ((d * Ho) % 8 == 0), d))
            return "planes", bc, Ho

    # Regime "rows": th output rows of a single plane per step (th | Ho), halo carried in VMEM.
    cands = [d for d in _divisors(Ho)
             if ok(2 * d, d) and (nc >= 2 or Ho // d >= 2 or Ho == 1)]
    if cands:
        th = max(cands, key=lambda d: (((2 * d) % 8 == 0) + (d % 8 == 0), d))
    else:
        # TODO(synk): for extremely wide images the dense (W, Wo) horizontal matrix itself gets
        # large; a lane-tiled horizontal pass would be needed.  Fall back to the smallest block.
        th = 1
    return "rows", 1, th


def l2pool2d(x: jax.Array, kernel_size: int = 3, stride: int = 2, padding: int = 1) -> jax.Array:
    if not (kernel_size == 3 and stride == 2 and padding == 1):
        # TODO(synk): general (kernel_size, stride, padding) needs different tap matrices.
        raise NotImplementedError("l2pool2d Pallas kernel supports kernel_size=3, stride=2, padding=1")

    N, C, H, W = x.shape
    Ho = (H + 2 * padding - kernel_size) // stride + 1
    Wo = (W + 2 * padding - kernel_size) // stride + 1
    NC = N * C
    itemsize = x.dtype.itemsize

    # Odd H: one zero row at the bottom so input-row blocks tile exactly (common even-H case
    # needs no pad).  TODO(synk): fold this rare pad into the kernel via a masked last row.
    if H % 2 == 1:
        x = jnp.pad(x, ((0, 0), (0, 0), (0, 1), (0, 0)))
    Hp = H + (H % 2)                       # = 2 * Ho

    # Native layout, zero extra HBM passes: contiguous reshape, W on the lane axis.
    x2d = x.reshape(NC * Hp, W)

    w3 = _hann_weights_1d(kernel_size)
    regime, bc, th = _plan(NC, Hp, W, Ho, Wo, itemsize)

    if regime == "planes":
        r_in, r_out = bc * Hp, bc * Ho
        grid = (NC // bc, 1)
        mv_np = _vertical_matrix_planes(bc, Ho, Hp, w3)
    else:
        r_in, r_out = 2 * th, th
        grid = (NC, Ho // th)
        mv_np = _vertical_matrix_rows(th, w3)

    n_rb = grid[1]                          # row blocks per plane(-group)
    idx = lambda c, r: (c * n_rb + r, 0)    # same row-block index for input and output

    mh = jnp.asarray(_horizontal_matrix(W, Wo, w3))
    mv = jnp.asarray(mv_np)

    fp = _footprint(r_in, r_out, W, Wo, itemsize)
    vmem_limit = int(min(_VMEM_CAP, max(16 * 1024 * 1024, int(1.5 * fp))))

    use_halo = (regime == "rows")
    first_tap = float(w3[0])

    def kernel(x_ref, mh_ref, mv_ref, o_ref, carry_ref):
        xv = x_ref[...].astype(jnp.float32)
        x2 = xv * xv                                              # square once, accumulate in f32
        # Horizontal Hann taps + stride-2 decimation on the MXU (contraction over the lane axis).
        hm = jnp.dot(x2, mh_ref[...],
                     preferred_element_type=jnp.float32,
                     precision=lax.Precision.HIGHEST)             # (r_in, Wo)
        # Vertical Hann taps + stride-2 decimation (+ plane-boundary zero pad) on the MXU.
        out = jnp.dot(mv_ref[...], hm,
                      preferred_element_type=jnp.float32,
                      precision=lax.Precision.HIGHEST)            # (r_out, Wo)
        if use_halo:
            # 1-row vertical halo: last input row of the previous row block (squared), carried in
            # persistent VMEM scratch.  Zero for the first block of each plane (= conv top pad).
            r = pl.program_id(1)
            halo = jnp.where(r > 0, carry_ref[...], jnp.zeros((1, W), jnp.float32))
            hm_halo = jnp.dot(halo, mh_ref[...],
                              preferred_element_type=jnp.float32,
                              precision=lax.Precision.HIGHEST)    # (1, Wo)
            row0 = (lax.broadcasted_iota(jnp.int32, (r_out, 1), 0) == 0).astype(jnp.float32)
            out = out + (first_tap * row0) * hm_halo              # halo only feeds local out row 0
            carry_ref[...] = x2[r_in - 1:r_in, :]                 # halo for the next row block
        o_ref[...] = jnp.sqrt(out + EPS).astype(o_ref.dtype)

    n_out = NC * Ho * Wo
    cost = pl.CostEstimate(
        flops=int(2 * NC * Hp * W * Wo + 2 * NC * Ho * Hp * Wo + 3 * NC * Hp * W),
        transcendentals=int(n_out),
        bytes_accessed=int((NC * Hp * W + n_out) * itemsize),
    )

    out2d = pl.pallas_call(
        kernel,
        out_shape=jax.ShapeDtypeStruct((NC * Ho, Wo), x.dtype),
        grid=grid,
        in_specs=[
            pl.BlockSpec((r_in, W), idx),                     # x rows (native layout)
            pl.BlockSpec((W, Wo), lambda c, r: (0, 0)),       # horizontal tap matrix (resident)
            pl.BlockSpec(mv.shape, lambda c, r: (0, 0)),      # vertical tap matrix (resident)
        ],
        out_specs=pl.BlockSpec((r_out, Wo), idx),
        scratch_shapes=[pltpu.VMEM((1, W), jnp.float32)],     # persistent halo carry
        compiler_params=pltpu.CompilerParams(
            dimension_semantics=("parallel", "arbitrary"),
            vmem_limit_bytes=vmem_limit,
        ),
        cost_estimate=cost,
    )(x2d, mh, mv)

    return out2d.reshape(N, C, Ho, Wo)


def l2pool2d_ref(x: jax.Array, kernel_size: int = 3, stride: int = 2, padding: int = 1) -> jax.Array:
    """Pure-JAX reference (mirrors the PyTorch grouped conv2d)."""
    N, C, H, W = x.shape
    w1d = _hann_weights_1d(kernel_size)
    k2d = np.outer(w1d, w1d).astype(np.float32)
    filt = jnp.broadcast_to(jnp.asarray(k2d, dtype=x.dtype), (C, 1, kernel_size, kernel_size))
    out = lax.conv_general_dilated(
        x * x,
        filt,
        window_strides=(stride, stride),
        padding=((padding, padding), (padding, padding)),
        dimension_numbers=("NCHW", "OIHW", "NCHW"),
        feature_group_count=C,
        precision=lax.Precision.HIGHEST,
    )
    return jnp.sqrt(out + EPS)


if __name__ == "__main__":
    key = jax.random.PRNGKey(0)
    x = jax.random.normal(key, (2, 4, 16, 16), dtype=jnp.float32)

    out = jax.block_until_ready(jax.jit(l2pool2d)(x))
    ref = jax.block_until_ready(l2pool2d_ref(x))

    assert out.shape == (2, 4, 8, 8), out.shape
    np.testing.assert_allclose(np.asarray(out), np.asarray(ref), rtol=1e-5, atol=1e-5)

    print("KERNEL_OK")
</pallas_src>

<mosaic_0001>
module attributes {stable_mosaic.version = 11 : i64} {
  func.func @kernel(%arg0: i32, %arg1: i32, %arg2: memref<64x16xf32, #tpu.memory_space<vmem>>, %arg3: memref<16x8xf32, #tpu.memory_space<vmem>>, %arg4: memref<32x64xf32, #tpu.memory_space<vmem>>, %arg5: memref<32x8xf32, #tpu.memory_space<vmem>>, %arg6: memref<1x16xf32, #tpu.memory_space<vmem>>) attributes {dimension_semantics = [#tpu.dimension_semantics<parallel>, #tpu.dimension_semantics<arbitrary>], iteration_bounds = array<i64: 2, 1>, scalar_prefetch = 0 : i64, scratch_operands = 1 : i64, tpu.core_type = #tpu.core_type<tc>, window_params = [{transform_indices = @transform_0, window_bounds = array<i64: 64, 16>}, {pipeline_mode = #tpu.pipeline_mode<synchronous>, transform_indices = @transform_1, window_bounds = array<i64: 16, 8>}, {pipeline_mode = #tpu.pipeline_mode<synchronous>, transform_indices = @transform_2, window_bounds = array<i64: 32, 64>}, {transform_indices = @transform_3, window_bounds = array<i64: 32, 8>}]} {
    %c0 = arith.constant 0 : index
    %c0_0 = arith.constant 0 : index
    %0 = vector.load %arg2[%c0, %c0_0] : memref<64x16xf32, #tpu.memory_space<vmem>>, vector<64x16xf32>
    %1 = arith.mulf %0, %0 : vector<64x16xf32>
    %c0_1 = arith.constant 0 : index
    %c0_2 = arith.constant 0 : index
    %2 = vector.load %arg3[%c0_1, %c0_2] : memref<16x8xf32, #tpu.memory_space<vmem>>, vector<16x8xf32>
    %cst = arith.constant dense<0.000000e+00> : vector<64x8xf32>
    %3 = tpu.matmul %1, %2, %cst {dimension_numbers = #tpu.dot_dimension_numbers<[1], [0], [0], [1], [0, 0, 1, 1], [], []>, precision = #tpu.contract_precision<fp32>} : vector<64x16xf32>, vector<16x8xf32>, vector<64x8xf32> -> vector<64x8xf32>
    %c0_3 = arith.constant 0 : index
    %c0_4 = arith.constant 0 : index
    %4 = vector.load %arg4[%c0_3, %c0_4] : memref<32x64xf32, #tpu.memory_space<vmem>>, vector<32x64xf32>
    %cst_5 = arith.constant dense<0.000000e+00> : vector<32x8xf32>
    %5 = tpu.matmul %4, %3, %cst_5 {dimension_numbers = #tpu.dot_dimension_numbers<[1], [0], [0], [1], [0, 0, 1, 1], [], []>, precision = #tpu.contract_precision<fp32>} : vector<32x64xf32>, vector<64x8xf32>, vector<32x8xf32> -> vector<32x8xf32>
    %cst_6 = arith.constant 9.99999996E-13 : f32
    %6 = vector.broadcast %cst_6 : f32 to vector<32x8xf32>
    %7 = arith.addf %5, %6 : vector<32x8xf32>
    %8 = math.sqrt %7 : vector<32x8xf32>
    %c0_7 = arith.constant 0 : index
    %c0_8 = arith.constant 0 : index
    %9 = vector.load %arg5[%c0_7, %c0_8] : memref<32x8xf32, #tpu.memory_space<vmem>>, vector<32x8xf32>
    tpu.vector_store %arg5[%c0_7, %c0_8], %8 {strides = array<i32>} : memref<32x8xf32, #tpu.memory_space<vmem>>, vector<32x8xf32>,
    return
  }
  func.func @transform_0(%arg0: i32, %arg1: i32) -> (i32, i32) {
    %c1_i32 = arith.constant 1 : i32
    %0 = arith.muli %arg0, %c1_i32 : i32
    %1 = arith.addi %0, %arg1 : i32
    %c0_i32 = arith.constant 0 : i32
    %c0_i32_0 = arith.constant 0 : i32
    return %1, %c0_i32 : i32, i32
  }
  func.func @transform_1(%arg0: i32, %arg1: i32) -> (i32, i32) {
    %c0_i32 = arith.constant 0 : i32
    %c0_i32_0 = arith.constant 0 : i32
    %c0_i32_1 = arith.constant 0 : i32
    return %c0_i32, %c0_i32_0 : i32, i32
  }
  func.func @transform_2(%arg0: i32, %arg1: i32) -> (i32, i32) {
    %c0_i32 = arith.constant 0 : i32
    %c0_i32_0 = arith.constant 0 : i32
    %c0_i32_1 = arith.constant 0 : i32
    return %c0_i32, %c0_i32_0 : i32, i32
  }
  func.func @transform_3(%arg0: i32, %arg1: i32) -> (i32, i32) {
    %c1_i32 = arith.constant 1 : i32
    %0 = arith.muli %arg0, %c1_i32 : i32
    %1 = arith.addi %0, %arg1 : i32
    %c0_i32 = arith.constant 0 : i32
    %c0_i32_0 = arith.constant 0 : i32
    return %1, %c0_i32 : i32, i32
  }
}

</mosaic_0001>

<bundles_post_ra>
// kernel: l2pool2d.1
= control target key start
LH: loop header
LB: loop body
LE: loop exit
PB: predicated region body
PF: predicated region fallthrough
CT: control target
= control target key end

     0   :  { %8 = vsyncpa [#allocation4], 0  ;;  %s3246_s0 = inlined_call_operand.hbm [shape: f32[128,16], index: 0, kind: input, shape index: {}]   ;;  %s3247_s1 = inlined_call_operand.hbm [shape: f32[16,8], index: 1, kind: input, shape index: {}]   ;;  %s3248_s2 = inlined_call_operand.hbm [shape: f32[32,64], index: 2, kind: input, shape index: {}]   ;;  %s3249_s3 = inlined_call_operand.hbm [shape: f32[64,8], index: 3, kind: output, shape index: {}]  }
   0x1   :  { %10 = vsyncpa [#allocation4 + $0x1], 0 }
   0x2   :  { %11 = vsyncpa [#allocation7], 0 }
   0x3   :  { %12 = vsyncpa [#allocation5], 0 }
   0x4   :  { %14 = vsyncpa [#allocation5 + $0x1], 0  ;;  %s2737_s12 = smov 0   ;;  %s2739_s13 = smov 0  }
   0x5   :  { %s2741_s14 = smov 0   ;;  %s2743_s15 = smov 0  }
   0x6   :  { %s2745_s16 = smov 0   ;;  %s2747_s17 = smov 0  }
   0x7 LB: > { %s1875_s18 = sadd.s32 4294967295, %s2707_s17   ;;  %s1876_s19 = sadd.s32 4294967294, %s2707_s17   ;;  %s2707_s17 = sphi %s2747_s17, %s20_s17   ;;  %s2703_s16 = sphi %s2745_s16, %s3271_s16   ;;  %s2699_s15 = sphi %s2743_s15, %s3270_s15   ;;  %s2695_s14 = sphi %s2741_s14, %s3269_s14   ;;  %s2691_s13 = sphi %s2739_s13, %s3268_s13   ;;  %s2687_s12 = sphi %s2737_s12, %s3267_s12  }
   0x8   : > { %p54_p0 = scmp.ne.s32.totalorder %s2691_s13, %s2687_s12  ;;  %p2771_p1 = scmp.eq.s32.totalorder %s1875_s18, 0 }
   0x9   : > { %p2775_p2 = scmp.eq.s32.totalorder %s1875_s18, 1  ;;  %p128_p3 = scmp.eq.s32.totalorder %s1876_s19, 1 }
   0xa   : > { %s3254_s20 = scalar_select %p2771_p1, 1, 0 }
   0xb   : > { %p2781_p4 = por %p2771_p1, %p54_p0  ;;  %p1877_p5 = scmp.ge.s32.totalorder %s2707_s17, 1 }
   0xc   : > { %p2786_p6 = por %p128_p3, %p54_p0  ;;  %p135_p7 = scmp.lt.s32.totalorder %s2707_s17, 3 }
   0xd   : > { %s3256_s22 = scalar_select %p2781_p4, 1, 0 }
   0xe   : > { %s3257_s23 = scalar_select %p2786_p6, 1, 0 }
   0xf   : > { %p2791_p8 = pnand %p1877_p5, %p135_p7  ;;  %s2709_s25 = smov [#allocation6]  }
  0x10   : > { %s147_s26 = sshll.u32 %s2709_s25, 4  ;;  %s2710_s28 = smov [#allocation8]   ;;  %s2795_s26 = int_to_ptr.vmem [resolvable:$true] %s147_s26 }
  0x11   : > { %p2452_p9 = pneg %p2791_p8  ;;  %s160_s29 = sshll.u32 %s2710_s28, 4  ;;  %s2806_s29 = int_to_ptr.vmem [resolvable:$true] %s160_s29 }
  0x12   : > { %s2535_s5 = scalar_lea.hbm %s3247_s1, 256 }
  0x13   : > { %p2802_p11 = pnand %p2452_p9, %p2771_p1  ;;  %p2536_p12 = scmp.ne.s32.totalorder %s3247_s1, %s2535_s5 }
  0x14   : > { %p2542_p5 = scmp.lt.u32.totalorder %s2535_s5, %s3247_s1 }
  0x15   : > { %p2537_p13 = pneg %p2802_p11 }
  0x17   : > { %p2538_p0 = pnand %p2537_p13, %p2536_p12 }
  0x19   : > { %p2539_p3 = pneg %p2538_p0 }
  0x1b   : > { %p2544_p7 = pnand %p2542_p5, %p2539_p3 }
  0x1d   : > { %2547 = shalt.err (!%p2544_p7)
}
  0x1e   : > { %s2548_s10 = scalar_lea.vmem %s2795_s26, 256  ;;  %p2556_p1 = scmp.lt.s32.totalorder %s2795_s26, %s2795_s26 }
  0x1f   : > { %p2549_p9 = scmp.ne.s32.totalorder %s2795_s26, %s2548_s10  ;;  %p2557_p12 = scmp.lt.s32.totalorder %s2548_s10, %s2548_s10 }
  0x21   : > { %p2551_p10 = pnand %p2549_p9, %p2537_p13  ;;  %p2558_p0 = por %p2557_p12, %p2556_p1 }
  0x23   : > { %p2552_p6 = pneg %p2551_p10 }
  0x25   : > { %p2559_p4 = pnand %p2558_p0, %p2552_p6 }
  0x27   : > { %2562 = shalt.err (!%p2559_p4)
}
  0x28   : > { %s2711_s11 = smov 128   ;;  %s2712_s18 = smov 8  }
  0x29   : > { %2455 = dma.hbm_to_vmem [thread:$0]  (!%p2802_p11), %s3247_s1, 256, %s2795_s26, [#allocation7], %s2711_s11, %s2711_s11, %s2712_s18  }
  0x2a   : > { %s2563_s4 = scalar_lea.hbm %s3248_s2, 512 }
  0x2b   : > { %p2564_p1 = scmp.ne.s32.totalorder %s3248_s2, %s2563_s4  ;;  %p2570_p10 = scmp.lt.u32.totalorder %s2563_s4, %s3248_s2 }
  0x2d   : > { %p2566_p4 = pnand %p2564_p1, %p2537_p13 }
  0x2f   : > { %p2567_p6 = pneg %p2566_p4 }
  0x31   : > { %p2572_p3 = pnand %p2570_p10, %p2567_p6 }
  0x33   : > { %2575 = shalt.err (!%p2572_p3)
}
  0x34   : > { %s2576_s26 = scalar_lea.vmem %s2806_s29, 512  ;;  %p2584_p12 = scmp.lt.s32.totalorder %s2806_s29, %s2806_s29 }
  0x35   : > { %p2577_p5 = scmp.ne.s32.totalorder %s2806_s29, %s2576_s26  ;;  %p2585_p0 = scmp.lt.s32.totalorder %s2576_s26, %s2576_s26 }
  0x37   : > { %p2579_p7 = pnand %p2577_p5, %p2537_p13  ;;  %p2586_p1 = por %p2585_p0, %p2584_p12 }
  0x39   : > { %p2580_p9 = pneg %p2579_p7 }
  0x3b   : > { %p2587_p4 = pnand %p2586_p1, %p2580_p9 }
  0x3d   : > { %2590 = shalt.err (!%p2587_p4)
}
  0x3e   : > { %2458 = dma.hbm_to_vmem [thread:$0]  (!%p2802_p11), %s3248_s2, 512, %s2806_s29, [#allocation7], %s2711_s11, %s2711_s11, %s2712_s18  }
  0x3f   : > { %s32_s27 = sadd.s32 1, %s2703_s16  ;;  %s41_s19 = sadd.s32 1, %s2695_s14 }
  0x40   : > { %p34_p13 = scmp.ge.s32.totalorder %s32_s27, 2  ;;  %p48_p6 = scmp.ne.s32.totalorder %s2695_s14, %s2691_s13 }
  0x41   : > { %p49_p10 = scmp.eq.s32.totalorder %s2707_s17, 0  ;;  %p2469_p3 = scmp.lt.s32.totalorder %s2707_s17, 2 }
  0x42   : > { %s3273_s27 = smov (%p34_p13, %s32_s27), 0  ;;  %p2876_p7 = por %p2775_p2, %p48_p6 }
  0x43   : > { %p50_p5 = por %p49_p10, %p48_p6  ;;  %s38_s28 = ssub.s32 %s2703_s16, %s3273_s27 }
  0x44   : > { %s3260_s25 = scalar_select %p2876_p7, 1, 0 }
  0x45   : > { %s174_s30 = sand.u32 1, %s2695_s14   ;;  %p39_p9 = scmp.eq.s32.totalorder %s38_s28, 0 }
  0x46   : > { %s1881_s29 = sshll.u32 %s174_s30, 6  ;;  %s1894_s4 = sshll.u32 %s2703_s16, 10 }
  0x47   : > { %s2885_s5 = scalar_select %p39_p9, %s2695_s14, %s41_s19  }
  0x48   : > { %s2890_s8 = scalar_lea.hbm %s3246_s0, %s1894_s4  ;;  %s178_s21 = scalar_lea.vmem [#allocation3], %s1881_s29 }
  0x49   : > { %s186_s26 = sshll.u32 %s178_s21, 4  ;;  %p2894_p2 = pnand %p2469_p3, %p50_p5  ;;  %s2898_s26 = int_to_ptr.vmem [resolvable:$true] %s186_s26 }
  0x4a   : > { %s2900_s10 = scalar_lea.sflag [#allocation4], %s174_s30  ;;  %s2591_s19 = scalar_lea.hbm %s2890_s8, 1024 }
  0x4b   : > { %p2592_p11 = scmp.ne.s32.totalorder %s2890_s8, %s2591_s19  ;;  %p2593_p12 = pneg %p2894_p2 }
  0x4c   : > { %s2596_s4 = scalar_lea.hbm %s3246_s0, 2048  ;;  %p2597_p4 = scmp.lt.u32.totalorder %s2890_s8, %s3246_s0 }
  0x4d   : > { %p2594_p0 = pnand %p2593_p12, %p2592_p11  ;;  %p2598_p13 = scmp.lt.u32.totalorder %s2596_s4, %s2591_s19 }
  0x4e   : > { %p2600_p10 = scmp.lt.u32.totalorder %s2591_s19, %s2890_s8 }
  0x4f   : > { %p2595_p1 = pneg %p2594_p0  ;;  %p2599_p6 = por %p2598_p13, %p2597_p4 }
  0x51   : > { %p2601_p3 = por %p2600_p10, %p2599_p6 }
  0x53   : > { %p2602_p5 = pnand %p2601_p3, %p2595_p1 }
  0x55   : > { %2605 = shalt.err (!%p2602_p5)
}
  0x56   : > { %s2606_s30 = scalar_lea.vmem %s2898_s26, 1024  ;;  %s2713_s21 = smov [#allocation3]  }
  0x57   : > { %p2607_p9 = scmp.ne.s32.totalorder %s2898_s26, %s2606_s30  ;;  %s2611_s28 = sshll.u32 %s2713_s21, 4  ;;  %s2612_s28 = int_to_ptr.vmem [resolvable:$false] %s2611_s28 }
  0x58   : > { %s2613_s29 = scalar_lea.vmem %s2612_s28, 2048  ;;  %p2614_p7 = scmp.lt.s32.totalorder %s2898_s26, %s2612_s28 }
  0x59   : > { %p2609_p11 = pnand %p2607_p9, %p2593_p12  ;;  %p2615_p4 = scmp.lt.s32.totalorder %s2613_s29, %s2606_s30 }
  0x5b   : > { %p2610_p0 = pneg %p2609_p11  ;;  %p2616_p13 = por %p2615_p4, %p2614_p7 }
  0x5d   : > { %p2617_p6 = pnand %p2616_p13, %p2610_p0 }
  0x5f   : > { %2620 = shalt.err (!%p2617_p6)
}
  0x60   : > { %2462 = dma.hbm_to_vmem [thread:$0]  (!%p2894_p2), %s2890_s8, 1024, %s2898_s26, %s2900_s10, %s2711_s11, %s2711_s11, %s2712_s18  }
  0x61   : > { %198 = sbr.rel (%p2791_p8) target bundleno = 766 (0x2fe), region = 32  ;;  %s2934_s19 = sand.u32 (!%p2791_p8), 1, %s2691_s13  }
  0x62   : > { %s1885_s4 = sshll.u32 (!%p2791_p8), %s2934_s19, 6  ;;  %s201_s6 = scalar_lea.sflag (!%p2791_p8), [#allocation4], %s2934_s19 }
  0x63   : > { %s2938_s7 = scalar_lea.vmem (!%p2791_p8), [#allocation3], %s1885_s4  ;;  %p3262_p7 = scmp.ne.s32.totalorder (!%p2791_p8), %s3256_s22, 0 }
  0x68   : > { %2674 = dma.done.wait (%p3262_p7), %s201_s6, 1024  }
  0x69   : > { %2676 = vsyncadd (%p3262_p7), %s201_s6, 4294966272  ;;  %p3263_p2 = scmp.ne.s32.totalorder %s3254_s20, 0 }
  0x6b   : > { %2678 = dma.done.wait (%p3263_p2), [#allocation7], 768  }
  0x6c   : > { %2680 = vsyncadd (%p3263_p2), [#allocation7], 4294966528  ;;  %v255_v0 = vld [vmem:[#allocation6] sm:$0xff]  ;;  %v256_v1 = vld [vmem:[#allocation6 + $0x8] sm:$0xff]  ;;  %vm257_vm0 = vcmask 130048   ;;  %vm1046_vm1 = vcmask 523264  }
  0x6d   : > { %v239_v2 = vld [vmem:[%s2938_s7] sm:$0xff]  ;;  %v283_v3 = vand.u32 4294901760, %v255_v0  ;;  %v286_v4 = vand.u32 4294901760, %v256_v1  ;;  %v240_v6 = vld [vmem:[%s2938_s7 + $0x8] sm:$0xff]  ;;  %v241_v7 = vld [vmem:[%s2938_s7 + $0x10] sm:$0xff]  ;;  %s1888_s20 = sshll.u32 %s2934_s19, 5 }
  0x6e   : > { %v247_v5 = vmul.f32 %v239_v2, %v239_v2  ;;  %v242_v8 = vld [vmem:[%s2938_s7 + $0x18] sm:$0xff]  ;;  %v248_v9 = vmul.f32 %v240_v6, %v240_v6  ;;  %v249_v10 = vmul.f32 %v241_v7, %v241_v7  ;;  %v243_v16 = vld [vmem:[%s2938_s7 + $0x20] sm:$0xff]  ;;  %v244_v17 = vld [vmem:[%s2938_s7 + $0x28] sm:$0xff]  ;;  %vm1753_vm3 = vcmask 64512   ;;  %s1895_s22 = sshll.u32 %s2699_s15, 9  ;;  %s234_s24 = scalar_lea.vmem [#allocation9], %s1888_s20 }
  0x6f   : > { %v250_v11 = vmul.f32 %v242_v8, %v242_v8  ;;  %v2952_v12 = vpack.c.bf16 %v286_v4, %v283_v3  ;;  %v2955_v14 = vsub.f32 %v255_v0, %v283_v3  ;;  %v2957_v15 = vsub.f32 %v256_v1, %v286_v4  ;;  %v245_v38 = vld [vmem:[%s2938_s7 + $0x30] sm:$0xff]  ;;  %v246_v47 = vld [vmem:[%s2938_s7 + $0x38] sm:$0xff]  ;;  %s1773_s11 = sshll.u32 %s234_s24, 4  ;;  %s3193_s8 = scalar_lea.hbm %s3249_s3, %s1895_s22  ;;  %s3195_s11 = int_to_ptr.vmem [resolvable:$true] %s1773_s11 }
  0x70   : > { %v259_v13 = vsel %vm257_vm0, %v247_v5, 0  ;;  %v262_v19 = vsel %vm257_vm0, %v248_v9, 0  ;;  %v265_v20 = vsel %vm257_vm0, %v249_v10, 0  ;;  %v251_v28 = vmul.f32 %v243_v16, %v243_v16  ;;  %s1759_s26 = scalar_lea.sflag [#allocation5], %s2934_s19  ;;  %s2621_s9 = scalar_lea.vmem %s3195_s11, 512 }
  0x71   : > { %v2961_v18 = vand.u32 4294901760, %v259_v13  ;;  %v268_v21 = vsel %vm257_vm0, %v250_v11, 0  ;;  %2257 = vmatprep.subr.bf16.mxu0 %v2952_v12  ;;  %v432_v22 = vand.u32 4294901760, %v2955_v14  ;;  %v439_v23 = vand.u32 4294901760, %v2957_v15  ;;  %p2622_p8 = scmp.ne.s32.totalorder %s3195_s11, %s2621_s9  ;;  %p3264_p12 = scmp.ne.s32.totalorder %s3260_s25, 0 }
  0x72   : > { %v2969_v24 = vand.u32 4294901760, %v262_v19  ;;  %v2971_v25 = vand.u32 4294901760, %v265_v20  ;;  %2259 = vmatpush3.bf16.msra.mxu0 %v2952_v12  ;;  %v2977_v27 = vand.u32 4294901760, %v268_v21  ;;  %v252_v29 = vmul.f32 %v244_v17, %v244_v17  ;;  %s2714_s10 = smov [#allocation9]  }
  0x73   : > { %v2975_v26 = vsub.f32 %v259_v13, %v2961_v18  ;;  %v433_v30 = vsub.f32 %v2955_v14, %v432_v22  ;;  %v440_v31 = vsub.f32 %v2957_v15, %v439_v23  ;;  %v271_v36 = vsel %vm257_vm0, %v251_v28, 0  ;;  %p2623_p1 = pnand %p2622_p8, %p3264_p12  ;;  %s2625_s30 = sshll.u32 %s2714_s10, 4  ;;  %s2626_s30 = int_to_ptr.vmem [resolvable:$false] %s2625_s30 }
  0x74   : > { %v2986_v32 = vsub.f32 %v262_v19, %v2969_v24  ;;  %v2989_v33 = vsub.f32 %v265_v20, %v2971_v25  ;;  %v2993_v35 = vsub.f32 %v268_v21, %v2977_v27  ;;  %v274_v37 = vsel %vm257_vm0, %v252_v29, 0  ;;  %s2627_s21 = scalar_lea.vmem %s2626_s30, 1024  ;;  %p2628_p3 = scmp.lt.s32.totalorder %s3195_s11, %s2626_s30 }
  0x75   : > { %v351_v34 = vand.u32 4294901760, %v2975_v26  ;;  %v434_v39 = vand.u32 4294901760, %v433_v30  ;;  %v441_v40 = vand.u32 4294901760, %v440_v31  ;;  %v3004_v45 = vand.u32 4294901760, %v271_v36  ;;  %p2624_p10 = pneg %p2623_p1  ;;  %p2629_p5 = scmp.lt.s32.totalorder %s2627_s21, %s2621_s9 }
  0x76   : > { %v361_v41 = vand.u32 4294901760, %v2986_v32  ;;  %v371_v42 = vand.u32 4294901760, %v2989_v33  ;;  %v381_v44 = vand.u32 4294901760, %v2993_v35  ;;  %v3006_v46 = vand.u32 4294901760, %v274_v37 }
  0x77   : > { %v352_v43 = vsub.f32 %v2975_v26, %v351_v34  ;;  %v2260_v48 = vpack.c.bf16 %v441_v40, %v434_v39  ;;  %v253_v51 = vmul.f32 %v245_v38, %v245_v38  ;;  %v3019_v54 = vsub.f32 %v271_v36, %v3004_v45  ;;  %p2630_p9 = por %p2629_p5, %p2628_p3 }
  0x78   : > { %v362_v49 = vsub.f32 %v2986_v32, %v361_v41  ;;  %v372_v50 = vsub.f32 %v2989_v33, %v371_v42  ;;  %v382_v53 = vsub.f32 %v2993_v35, %v381_v44  ;;  %v3022_v55 = vsub.f32 %v274_v37, %v3006_v46 }
  0x79   : > { %v353_v52 = vand.u32 4294901760, %v352_v43  ;;  %2261 = vmatprep.subr.bf16.mxu0 %v2260_v48  ;;  %v277_v58 = vsel %vm257_vm0, %v253_v51, 0  ;;  %v254_v59 = vmul.f32 %v246_v47, %v246_v47  ;;  %v391_v60 = vand.u32 4294901760, %v3019_v54  ;;  %p2631_p11 = pnand %p2630_p9, %p2624_p10 }
  0x7a   : > { %v363_v56 = vand.u32 4294901760, %v362_v49  ;;  %v373_v57 = vand.u32 4294901760, %v372_v50  ;;  %v401_v61 = vand.u32 4294901760, %v3022_v55  ;;  %v3027_v62 = vand.u32 4294901760, %v277_v58 }
  0x7b   : > { %2032 = vmatprep.mubr.f32.mxu0 %v353_v52  ;;  %v383_v63 = vand.u32 4294901760, %v382_v53  ;;  %v280_v0 = vsel %vm257_vm0, %v254_v59, 0  ;;  %v2264_v1 = vpack.c.bf16 %v2957_v15, %v2955_v14  ;;  %v392_v2 = vsub.f32 %v3019_v54, %v391_v60 }
  0x7c   : > { %2033 = vmatmul.mubr.f32.vlgmr.msra.gmra.mrb[0].mxu0 %v363_v56  ;;  %v402_v3 = vsub.f32 %v3022_v55, %v401_v61  ;;  %v410_v4 = vsub.f32 %v277_v58, %v3027_v62  ;;  %v419_v5 = vand.u32 4294901760, %v280_v0  ;;  %v2272_v19 = vpack.c.bf16 %v439_v23, %v432_v22  ;;  %v1043_v23 = vld [vmem:[#allocation8 + $0x8] sm:$0xff] }
  0x7d   : > { %2263 = vmatpush3.bf16.msra.mxu0 %v2260_v48  ;;  %2035 = vmatprep.mubr.f32.mxu0 %v373_v57  ;;  %v393_v6 = vand.u32 4294901760, %v392_v2 }
  0x7e   : > { %2265 = vmatprep.subr.bf16.mxu0 %v2264_v1  ;;  %v411_v7 = vand.u32 4294901760, %v410_v4  ;;  %v420_v8 = vsub.f32 %v280_v0, %v419_v5  ;;  %v403_v9 = vand.u32 4294901760, %v402_v3 }
  0x80   : > { %2036 = vmatmul.mubr.f32.gmra.mrb[2].mxu0 %v383_v63  ;;  %v412_v10 = vsub.f32 %v410_v4, %v411_v7  ;;  %v421_v11 = vand.u32 4294901760, %v420_v8 }
  0x81   : > { %2038 = vmatprep.mubr.f32.mxu0 %v393_v6 }
  0x82   : > { %v413_v13 = vand.u32 4294901760, %v412_v10  ;;  %v422_v16 = vsub.f32 %v420_v8, %v421_v11 }
  0x84   : > { %2039 = vmatmul.mubr.f32.gmra.mrb[4].mxu0 %v403_v9  ;;  %v423_v17 = vand.u32 4294901760, %v422_v16 }
  0x85   : > { %2041 = vmatprep.mubr.f32.mxu0 %v413_v13 }
  0x88   : > { %2042 = vmatmul.mubr.f32.gmra.mrb[6].mxu0 %v423_v17 }
  0x89   : > { %2048 = vmatprep.mubr.f32.mxu0 %v2961_v18 }
  0x8c   : > { %2049 = vmatmul.mubr.f32.vlgmr.msra.gmra.mrb[0].mxu0 %v2969_v24 }
  0x8d   : > { %2267 = vmatpush3.bf16.msra.mxu0 %v2264_v1  ;;  %2051 = vmatprep.mubr.f32.mxu0 %v2971_v25 }
  0x8e   : > { %2269 = vmatprep.subr.bf16.mxu0 %v2952_v12 }
  0x90   : > { %2052 = vmatmul.mubr.f32.gmra.mrb[2].mxu0 %v2977_v27 }
  0x91   : > { %2054 = vmatprep.mubr.f32.mxu0 %v3004_v45 }
  0x94   : > { %2055 = vmatmul.mubr.f32.gmra.mrb[4].mxu0 %v3006_v46 }
  0x95   : > { %2057 = vmatprep.mubr.f32.mxu0 %v3027_v62 }
  0x98   : > { %2058 = vmatmul.mubr.f32.gmra.mrb[6].mxu0 %v419_v5 }
  0x99   : > { %2064 = vmatprep.mubr.f32.mxu0 %v2975_v26  ;;  %v1044_v26 = vld [vmem:[#allocation8 + $0x10] sm:$0xff] }
  0x9a   : > { %v1054_v29 = vsel %vm1046_vm1, %v1044_v26, 0 }
  0x9b   : > { %v3092_v36 = vand.u32 4294901760, %v1054_v29 }
  0x9c   : > { %2065 = vmatmul.mubr.f32.vlgmr.msra.gmra.mrb[0].mxu0 %v2986_v32 }
  0x9d   : > { %2271 = vmatpush3.bf16.msra.mxu0 %v2952_v12  ;;  %2067 = vmatprep.mubr.f32.mxu0 %v2989_v33  ;;  %v3104_v50 = vsub.f32 %v1054_v29, %v3092_v36 }
  0x9e   : > { %2273 = vmatprep.subr.bf16.mxu0 %v2272_v19 }
  0xa0   : > { %2068 = vmatmul.mubr.f32.gmra.mrb[2].mxu0 %v2993_v35 }
  0xa1   : > { %2070 = vmatprep.mubr.f32.mxu0 %v3019_v54 }
  0xa4   : > { %2071 = vmatmul.mubr.f32.gmra.mrb[4].mxu0 %v3022_v55 }
  0xa5   : > { %2073 = vmatprep.mubr.f32.mxu0 %v410_v4  ;;  %v1154_v4 = vand.u32 4294901760, %v3104_v50 }
  0xa7   : > { %v1155_v26 = vsub.f32 %v3104_v50, %v1154_v4 }
  0xa8   : > { %2074 = vmatmul.mubr.f32.gmra.mrb[6].mxu0 %v420_v8 }
  0xa9   : > { %2080 = vmatprep.mubr.f32.mxu0 %v351_v34 }
  0xac   : > { %2081 = vmatmul.mubr.f32.vlgmr.msra.gmra.mrb[0].mxu0 %v361_v41 }
  0xad   : > { %2275 = vmatpush3.bf16.msra.mxu0 %v2272_v19  ;;  %2083 = vmatprep.mubr.f32.mxu0 %v371_v42 }
  0xae   : > { %2277 = vmatprep.subr.bf16.mxu0 %v2952_v12 }
  0xb0   : > { %2084 = vmatmul.mubr.f32.gmra.mrb[2].mxu0 %v381_v44 }
  0xb1   : > { %2086 = vmatprep.mubr.f32.mxu0 %v391_v60 }
  0xb4   : > { %2087 = vmatmul.mubr.f32.gmra.mrb[4].mxu0 %v401_v61 }
  0xb5   : > { %2089 = vmatprep.mubr.f32.mxu0 %v411_v7 }
  0xb8   : > { %2090 = vmatmul.mubr.f32.gmra.mrb[6].mxu0 %v421_v11 }
  0xb9   : > { %2096 = vmatprep.mubr.f32.mxu0 %v2961_v18 }
  0xbc   : > { %2097 = vmatmul.mubr.f32.vlgmr.msra.gmra.mrb[0].mxu0 %v2969_v24 }
  0xbd   : > { %2279 = vmatpush3.bf16.msra.mxu0 %v2952_v12  ;;  %2099 = vmatprep.mubr.f32.mxu0 %v2971_v25  ;;  %v1042_v12 = vld [vmem:[#allocation8] sm:$0xff] }
  0xbe   : > { %v1048_v14 = vsel %vm1046_vm1, %v1042_v12, 0 }
  0xbf   : > { %v3078_v15 = vand.u32 4294901760, %v1048_v14 }
  0xc0   : > { %2100 = vmatmul.mubr.f32.gmra.mrb[2].mxu0 %v2977_v27 }
  0xc1   : > { %2102 = vmatprep.mubr.f32.mxu0 %v3004_v45 }
  0xc4   : > { %2103 = vmatmul.mubr.f32.gmra.mrb[4].mxu0 %v3006_v46 }
  0xc5   : > { %2105 = vmatprep.mubr.f32.mxu0 %v3027_v62 }
  0xc8   : > { %2106 = vmatmul.mubr.f32.gmra.mrb[6].mxu0 %v419_v5 }
  0xc9   : > { %2112 = vmatprep.mubr.f32.mxu0 %v2961_v18  ;;  %v3081_v18 = vsub.f32 %v1048_v14, %v3078_v15 }
  0xcb   : > { %v1134_v20 = vand.u32 4294901760, %v3081_v18 }
  0xcc   : > { %2113 = vmatmul.mubr.f32.vlgmr.msra.gmra.mrb[0].mxu0 %v2969_v24  ;;  %v1051_v24 = vsel %vm1046_vm1, %v1043_v23, 0 }
  0xcd   : > { %2115 = vmatprep.mubr.f32.mxu0 %v2971_v25  ;;  %v1135_v21 = vsub.f32 %v3081_v18, %v1134_v20  ;;  %v3087_v25 = vand.u32 4294901760, %v1051_v24 }
  0xcf   : > { %v1136_v22 = vand.u32 4294901760, %v1135_v21  ;;  %v3090_v33 = vsub.f32 %v1051_v24, %v3087_v25 }
  0xd0   : > { %2116 = vmatmul.mubr.f32.gmra.mrb[2].mxu0 %v2977_v27  ;;  %v1045_v27 = vld [vmem:[#allocation8 + $0x18] sm:$0xff] }
  0xd1   : > { %2118 = vmatprep.mubr.f32.mxu0 %v3004_v45  ;;  %2140 = vmatprep.mubr.f32.mxu1 %v1136_v22  ;;  %v1057_v30 = vsel %vm1046_vm1, %v1045_v27, 0  ;;  %v1144_v44 = vand.u32 4294901760, %v3090_v33 }
  0xd2   : > { %v3094_v37 = vand.u32 4294901760, %v1057_v30 }
  0xd3   : > { %v1145_v61 = vsub.f32 %v3090_v33, %v1144_v44 }
  0xd4   : > { %2119 = vmatmul.mubr.f32.gmra.mrb[4].mxu0 %v3006_v46  ;;  %v3107_v51 = vsub.f32 %v1057_v30, %v3094_v37 }
  0xd5   : > { %2121 = vmatprep.mubr.f32.mxu0 %v3027_v62 }
  0xd8   : > { %2122 = vmatmul.mubr.f32.gmra.mrb[6].mxu0 %v419_v5  ;;  %v1164_v5 = vand.u32 4294901760, %v3107_v51 }
 0x19f   : > { %v2114_v28 = vpop.f32.mrb[0].mxu0 }
 0x1a0   : > { %v1063_v31 = vand.u32 4294901760, %v2114_v28  ;;  %v996_v32 = vpop.f32.mrb[1].mxu0 }
 0x1a1   : > { %v1060_v34 = vand.u32 4294901760, %v996_v32 }
 0x1a2   : > { %v1181_v35 = vsub.f32 %v2114_v28, %v1063_v31 }
 0x1a3   : > { %v3096_v38 = vpack.c.bf16 %v1063_v31, %v1060_v34  ;;  %v1174_v39 = vsub.f32 %v996_v32, %v1060_v34  ;;  %v2117_v40 = vpop.f32.mrb[2].mxu0  ;;  %v1146_v32 = vand.u32 4294901760, %v1145_v61 }
 0x1a4   : > { %v1182_v41 = vand.u32 4294901760, %v1181_v35  ;;  %v1069_v42 = vand.u32 4294901760, %v2117_v40  ;;  %v1008_v43 = vpop.f32.mrb[3].mxu0 }
 0x1a5   : > { %v1175_v45 = vand.u32 4294901760, %v1174_v39  ;;  %v1066_v46 = vand.u32 4294901760, %v1008_v43  ;;  %2281 = vmatprep.subr.bf16.mxu1 %v3096_v38  ;;  %v3100_v47 = vpack.c.bf16 %v1181_v35, %v1174_v39 }
 0x1a6   : > { %v1183_v48 = vsub.f32 %v1181_v35, %v1182_v41  ;;  %v1195_v49 = vsub.f32 %v2117_v40, %v1069_v42  ;;  %2283 = vmatpush3.bf16.msra.mxu1 %v3096_v38 }
 0x1a7   : > { %v1176_v52 = vsub.f32 %v1174_v39, %v1175_v45  ;;  %v3109_v53 = vpack.c.bf16 %v1069_v42, %v1066_v46  ;;  %v1188_v54 = vsub.f32 %v1008_v43, %v1066_v46  ;;  %v2120_v55 = vpop.f32.mrb[4].mxu0  ;;  %v3111_v56 = vpack.c.bf16 %v1182_v41, %v1175_v45 }
 0x1a8   : > { %v1196_v57 = vand.u32 4294901760, %v1195_v49  ;;  %v1075_v58 = vand.u32 4294901760, %v2120_v55  ;;  %v1020_v59 = vpop.f32.mrb[5].mxu0  ;;  %v1184_v60 = vand.u32 4294901760, %v1183_v48  ;;  %v1165_v41 = vsub.f32 %v3107_v51, %v1164_v5 }
 0x1a9   : > { %v1189_v62 = vand.u32 4294901760, %v1188_v54  ;;  %v1072_v63 = vand.u32 4294901760, %v1020_v59  ;;  %2285 = vmatprep.subr.bf16.mxu1 %v3109_v53  ;;  %v1177_v0 = vand.u32 4294901760, %v1176_v52  ;;  %v3117_v1 = vpack.c.bf16 %v1195_v49, %v1188_v54 }
 0x1aa   : > { %v1197_v2 = vsub.f32 %v1195_v49, %v1196_v57  ;;  %v1209_v3 = vsub.f32 %v2120_v55, %v1075_v58  ;;  %2287 = vmatpush3.bf16.msra.mxu1 %v3109_v53  ;;  %v1156_v45 = vand.u32 4294901760, %v1155_v26  ;;  %v1166_v55 = vand.u32 4294901760, %v1165_v41 }
 0x1ab   : > { %v1190_v6 = vsub.f32 %v1188_v54, %v1189_v62  ;;  %v3122_v7 = vpack.c.bf16 %v1075_v58, %v1072_v63  ;;  %v1202_v8 = vsub.f32 %v1020_v59, %v1072_v63  ;;  %v2123_v9 = vpop.f32.mrb[6].mxu0  ;;  %v2296_v10 = vpack.c.bf16 %v1184_v60, %v1177_v0 }
 0x1ac   : > { %v1210_v11 = vand.u32 4294901760, %v1209_v3  ;;  %v1081_v13 = vand.u32 4294901760, %v2123_v9  ;;  %v1032_v16 = vpop.f32.mrb[7].mxu0  ;;  %v1198_v17 = vand.u32 4294901760, %v1197_v2  ;;  %v3124_v19 = vpack.c.bf16 %v1196_v57, %v1189_v62 }
 0x1ad   : > { %v1203_v12 = vand.u32 4294901760, %v1202_v8  ;;  %v1078_v14 = vand.u32 4294901760, %v1032_v16  ;;  %2289 = vmatprep.subr.bf16.mxu1 %v3122_v7  ;;  %v1191_v21 = vand.u32 4294901760, %v1190_v6  ;;  %v2320_v22 = vpack.c.bf16 %v1209_v3, %v1202_v8 }
 0x1ae   : > { %v1211_v23 = vsub.f32 %v1209_v3, %v1210_v11  ;;  %v1223_v24 = vsub.f32 %v2123_v9, %v1081_v13  ;;  %2291 = vmatpush3.bf16.msra.mxu1 %v3122_v7 }
 0x1af   : > { %v1204_v27 = vsub.f32 %v1202_v8, %v1203_v12  ;;  %v3131_v28 = vpack.c.bf16 %v1081_v13, %v1078_v14  ;;  %v1216_v29 = vsub.f32 %v1032_v16, %v1078_v14  ;;  %v2300_v30 = vpack.c.bf16 %v1198_v17, %v1191_v21 }
 0x1b0   : > { %v1224_v31 = vand.u32 4294901760, %v1223_v24  ;;  %v1212_v34 = vand.u32 4294901760, %v1211_v23  ;;  %v2352_v35 = vpack.c.bf16 %v1210_v11, %v1203_v12 }
 0x1b1   : > { %v1217_v39 = vand.u32 4294901760, %v1216_v29  ;;  %2293 = vmatprep.subr.bf16.mxu1 %v3131_v28  ;;  %v1205_v40 = vand.u32 4294901760, %v1204_v27  ;;  %v2324_v42 = vpack.c.bf16 %v1223_v24, %v1216_v29 }
 0x1b2   : > { %v1225_v43 = vsub.f32 %v1223_v24, %v1224_v31  ;;  %2295 = vmatpush3.bf16.msra.mxu1 %v3131_v28 }
 0x1b3   : > { %v1218_v46 = vsub.f32 %v1216_v29, %v1217_v39  ;;  %2297 = vmatprep.subr.bf16.mxu1 %v2296_v10  ;;  %v2304_v48 = vpack.c.bf16 %v1212_v34, %v1205_v40  ;;  %v2356_v49 = vpack.c.bf16 %v1224_v31, %v1217_v39 }
 0x1b4   : > { %v1226_v52 = vand.u32 4294901760, %v1225_v43 }
 0x1b5   : > { %v1219_v54 = vand.u32 4294901760, %v1218_v46  ;;  %2141 = vmatmul.mubr.f32.vlgmr.msra.gmra.mrb[0].mxu1 %v1146_v32 }
 0x1b6   : > { %2299 = vmatpush3.bf16.msra.mxu1 %v2296_v10  ;;  %2143 = vmatprep.mubr.f32.mxu1 %v1156_v45 }
 0x1b7   : > { %2301 = vmatprep.subr.bf16.mxu1 %v2300_v30  ;;  %v2308_v57 = vpack.c.bf16 %v1226_v52, %v1219_v54 }
 0x1b9   : > { %2144 = vmatmul.mubr.f32.gmra.mrb[2].mxu1 %v1166_v55 }
 0x1ba   : > { %2303 = vmatpush3.bf16.msra.mxu1 %v2300_v30  ;;  %2162 = vmatprep.mubr.f32.mxu1 %v3078_v15 }
 0x1bb   : > { %2305 = vmatprep.subr.bf16.mxu1 %v2304_v48 }
 0x1be   : > { %2307 = vmatpush3.bf16.msra.mxu1 %v2304_v48 }
 0x1bf   : > { %2309 = vmatprep.subr.bf16.mxu1 %v2308_v57 }
 0x1c2   : > { %2311 = vmatpush3.bf16.msra.mxu1 %v2308_v57 }
 0x1c3   : > { %2313 = vmatprep.subr.bf16.mxu1 %v3100_v47 }
 0x1c5   : > { %2163 = vmatmul.mubr.f32.vlgmr.msra.gmra.mrb[0].mxu1 %v3087_v25 }
 0x1c6   : > { %2315 = vmatpush3.bf16.msra.mxu1 %v3100_v47  ;;  %2165 = vmatprep.mubr.f32.mxu1 %v3092_v36 }
 0x1c7   : > { %2317 = vmatprep.subr.bf16.mxu1 %v3117_v1 }
 0x1c9   : > { %2166 = vmatmul.mubr.f32.gmra.mrb[2].mxu1 %v3094_v37 }
 0x1ca   : > { %2319 = vmatpush3.bf16.msra.mxu1 %v3117_v1  ;;  %2184 = vmatprep.mubr.f32.mxu1 %v3081_v18 }
 0x1cb   : > { %2321 = vmatprep.subr.bf16.mxu1 %v2320_v22 }
 0x1ce   : > { %2323 = vmatpush3.bf16.msra.mxu1 %v2320_v22 }
 0x1cf   : > { %2325 = vmatprep.subr.bf16.mxu1 %v2324_v42 }
 0x1d2   : > { %2327 = vmatpush3.bf16.msra.mxu1 %v2324_v42 }
 0x1d3   : > { %2329 = vmatprep.subr.bf16.mxu1 %v3096_v38 }
 0x1d5   : > { %2185 = vmatmul.mubr.f32.vlgmr.msra.gmra.mrb[0].mxu1 %v3090_v33 }
 0x1d6   : > { %2331 = vmatpush3.bf16.msra.mxu1 %v3096_v38  ;;  %2187 = vmatprep.mubr.f32.mxu1 %v3104_v50 }
 0x1d7   : > { %2333 = vmatprep.subr.bf16.mxu1 %v3109_v53 }
 0x1d9   : > { %2188 = vmatmul.mubr.f32.gmra.mrb[2].mxu1 %v3107_v51 }
 0x1da   : > { %2335 = vmatpush3.bf16.msra.mxu1 %v3109_v53  ;;  %2206 = vmatprep.mubr.f32.mxu1 %v1134_v20 }
 0x1db   : > { %2337 = vmatprep.subr.bf16.mxu1 %v3122_v7 }
 0x1de   : > { %2339 = vmatpush3.bf16.msra.mxu1 %v3122_v7 }
 0x1df   : > { %2341 = vmatprep.subr.bf16.mxu1 %v3131_v28 }
 0x1e2   : > { %2343 = vmatpush3.bf16.msra.mxu1 %v3131_v28 }
 0x1e3   : > { %2345 = vmatprep.subr.bf16.mxu1 %v3111_v56 }
 0x1e5   : > { %2207 = vmatmul.mubr.f32.vlgmr.msra.gmra.mrb[0].mxu1 %v1144_v44 }
 0x1e6   : > { %2347 = vmatpush3.bf16.msra.mxu1 %v3111_v56  ;;  %2209 = vmatprep.mubr.f32.mxu1 %v1154_v4 }
 0x1e7   : > { %2349 = vmatprep.subr.bf16.mxu1 %v3124_v19 }
 0x1e9   : > { %2210 = vmatmul.mubr.f32.gmra.mrb[2].mxu1 %v1164_v5 }
 0x1ea   : > { %2351 = vmatpush3.bf16.msra.mxu1 %v3124_v19  ;;  %2228 = vmatprep.mubr.f32.mxu1 %v3078_v15 }
 0x1eb   : > { %2353 = vmatprep.subr.bf16.mxu1 %v2352_v35 }
 0x1ee   : > { %2355 = vmatpush3.bf16.msra.mxu1 %v2352_v35 }
 0x1ef   : > { %2357 = vmatprep.subr.bf16.mxu1 %v2356_v49 }
 0x1f2   : > { %2359 = vmatpush3.bf16.msra.mxu1 %v2356_v49 }
 0x1f3   : > { %2361 = vmatprep.subr.bf16.mxu1 %v3096_v38 }
 0x1f5   : > { %2229 = vmatmul.mubr.f32.vlgmr.msra.gmra.mrb[0].mxu1 %v3087_v25 }
 0x1f6   : > { %2363 = vmatpush3.bf16.msra.mxu1 %v3096_v38  ;;  %2231 = vmatprep.mubr.f32.mxu1 %v3092_v36 }
 0x1f7   : > { %2365 = vmatprep.subr.bf16.mxu1 %v3109_v53 }
 0x1f9   : > { %2232 = vmatmul.mubr.f32.gmra.mrb[2].mxu1 %v3094_v37 }
 0x1fa   : > { %2367 = vmatpush3.bf16.msra.mxu1 %v3109_v53  ;;  %2250 = vmatprep.mubr.f32.mxu1 %v3078_v15 }
 0x1fb   : > { %2369 = vmatprep.subr.bf16.mxu1 %v3122_v7 }
 0x1fe   : > { %2371 = vmatpush3.bf16.msra.mxu1 %v3122_v7 }
 0x1ff   : > { %2373 = vmatprep.subr.bf16.mxu1 %v3131_v28 }
 0x202   : > { %2375 = vmatpush3.bf16.msra.mxu1 %v3131_v28 }
 0x205   : > { %2251 = vmatmul.mubr.f32.vlgmr.msra.gmra.mrb[0].mxu1 %v3087_v25 }
 0x206   : > { %2253 = vmatprep.mubr.f32.mxu1 %v3092_v36 }
 0x209   : > { %2254 = vmatmul.mubr.f32.gmra.mrb[2].mxu1 %v3094_v37 }
 0x2d8   : > { %v2252_v18 = vpop.f32.mrb[0].mxu1 }
 0x2d9   : > { %v2376_v20 = vadd.f32 1e-12, %v2252_v18  ;;  %v1703_v33 = vpop.f32.mrb[1].mxu1 }
 0x2da   : > { %v2377_v38 = vadd.f32 1e-12, %v1703_v33 }
 0x2db   : > { %2527 = vrsqrt.f32 %v2376_v20  ;;  %vm1734_vm2 = vcmp.eq.f32.partialorder %v2376_v20, inf  ;;  %v1737_v36 = vand.u32 2147483648, %v2376_v20  ;;  %vm1736_vm4 = vcmp.eq.f32.partialorder %v2376_v20, 0.0 }
 0x2dc   : > { %2529 = vrsqrt.f32 %v2377_v38  ;;  %v2255_v15 = vpop.f32.mrb[2].mxu1  ;;  %vm1727_vm5 = vcmp.eq.f32.partialorder %v2377_v38, inf  ;;  %v1730_v58 = vand.u32 2147483648, %v2377_v38  ;;  %vm1729_vm6 = vcmp.eq.f32.partialorder %v2377_v38, 0.0 }
 0x2dd   : > { %v2378_v44 = vadd.f32 1e-12, %v2255_v15  ;;  %v1715_v47 = vpop.f32.mrb[3].mxu1 }
 0x2de   : > { %v2379_v50 = vadd.f32 1e-12, %v1715_v47 }
 0x2df   : > { %2531 = vrsqrt.f32 %v2378_v44  ;;  %vm1748_vm7 = vcmp.eq.f32.partialorder %v2378_v44, inf  ;;  %v1751_v1 = vand.u32 2147483648, %v2378_v44  ;;  %vm1750_vm8 = vcmp.eq.f32.partialorder %v2378_v44, 0.0 }
 0x2e0   : > { %2533 = vrsqrt.f32 %v2379_v50  ;;  %vm1741_vm9 = vcmp.eq.f32.partialorder %v2379_v50, inf  ;;  %v1744_v4 = vand.u32 2147483648, %v2379_v50  ;;  %vm1743_vm10 = vcmp.eq.f32.partialorder %v2379_v50, 0.0 }
 0x2e5   : > { %v2528_v51 = vpop.eup %2527 }
 0x2e6   : > { %v2530_v25 = vpop.eup %2529  ;;  %v1733_v53 = vmul.f32 %v2528_v51, %v2376_v20 }
 0x2e7   : > { %v1726_v37 = vmul.f32 %v2530_v25, %v2377_v38 }
 0x2e8   : > { %v1735_v56 = vsel %vm1734_vm2, %v2376_v20, %v1733_v53 }
 0x2e9   : > { %v2532_v59 = vpop.eup %2531  ;;  %v1738_v60 = vsel %vm1736_vm4, %v1737_v36, %v1735_v56  ;;  %v1728_v61 = vsel %vm1727_vm5, %v2377_v38, %v1726_v37 }
 0x2ea   : > { %v2534_v62 = vpop.eup %2533  ;;  %v1731_v63 = vsel %vm1729_vm6, %v1730_v58, %v1728_v61  ;;  %v1747_v0 = vmul.f32 %v2532_v59, %v2378_v44  ;;  %1755 = vst.msk [vmem:[%s234_s24 + $0x8] sm:$0xff] %vm1753_vm3, %v1738_v60 }
 0x2eb   : > { %v1740_v2 = vmul.f32 %v2534_v62, %v2379_v50  ;;  %1754 = vst.msk [vmem:[%s234_s24] sm:$0xff] %vm1753_vm3, %v1731_v63 }
 0x2ec   : > { %v1749_v3 = vsel %vm1748_vm7, %v2378_v44, %v1747_v0 }
 0x2ed   : > { %v1752_v5 = vsel %vm1750_vm8, %v1751_v1, %v1749_v3  ;;  %v1742_v6 = vsel %vm1741_vm9, %v2379_v50, %v1740_v2 }
 0x2ee   : > { %v1745_v7 = vsel %vm1743_vm10, %v1744_v4, %v1742_v6  ;;  %1757 = vst.msk [vmem:[%s234_s24 + $0x18] sm:$0xff] %vm1753_vm3, %v1752_v5 }
 0x2ef   : > { %1756 = vst.msk [vmem:[%s234_s24 + $0x10] sm:$0xff] %vm1753_vm3, %v1745_v7 }
 0x2f0   : > { %2634 = shalt.err (!%p2631_p11)
}
 0x2f1   : > { %s2635_s28 = scalar_lea.hbm %s3193_s8, 512  ;;  %s2639_s6 = scalar_lea.hbm %s3249_s3, 1024 }
 0x2f2   : > { %p2636_p0 = scmp.ne.s32.totalorder %s3193_s8, %s2635_s28  ;;  %p2640_p6 = scmp.lt.u32.totalorder %s3193_s8, %s3249_s3 }
 0x2f3   : > { %p2641_p7 = scmp.lt.u32.totalorder %s2639_s6, %s2635_s28  ;;  %p2643_p8 = scmp.lt.u32.totalorder %s2635_s28, %s3193_s8 }
 0x2f4   : > { %p2637_p4 = pnand %p2636_p0, %p3264_p12 }
 0x2f5   : > { %p2642_p2 = por %p2641_p7, %p2640_p6 }
 0x2f6   : > { %p2638_p13 = pneg %p2637_p4 }
 0x2f7   : > { %p2644_p1 = por %p2643_p8, %p2642_p2 }
 0x2f9   : > { %p2645_p10 = pnand %p2644_p1, %p2638_p13 }
 0x2fb   : > { %2648 = shalt.err (!%p2645_p10)
}
 0x2fc   : > { %s2715_s22 = smov 128   ;;  %s2716_s24 = smov 8  }
 0x2fd   : > { %2450 = dma.vmem_to_hbm [thread:$0]  (%p3264_p12), %s3195_s11, 512, %s3193_s8, %s1759_s26, %s2715_s22, %s2715_s22, %s2716_s24  }
 0x2fe PF: > { %s1788_s18 = sand.u32 1, %s2687_s12   ;;  %p3265_p3 = scmp.ne.s32.totalorder %s3257_s23, 0 }
 0x2ff   : > { %p3266_p5 = scmp.ge.s32.totalorder %s2707_s17, 2  ;;  %s1789_s15 = scalar_lea.sflag [#allocation5], %s1788_s18 }
 0x301   : > { %p2464_p9 = pnand %p3266_p5, %p3265_p3 }
 0x303   : > { %2682 = dma.done.wait (!%p2464_p9), %s1789_s15, 512  }
 0x304   : > { %2684 = vsyncadd (!%p2464_p9), %s1789_s15, 4294966784  ;;  %s20_s17 = sadd.s32 1, %s2707_s17   ;;  %s3267_s12 = smov %s2691_s13 }
 0x305   : > { %p17_p11 = scmp.ge.s32.totalorder %s20_s17, 4   ;;  %s3268_s13 = smov %s2695_s14 }
 0x306   : > { %s3269_s14 = smov %s2885_s5  ;;  %s3270_s15 = smov %s2703_s16 }
 0x307   : > { %s3271_s16 = smov %s3273_s27  ;;  %19 = sbr.rel (!%p17_p11) target bundleno = 7 (0x7), region = 85 }
 0x30e   :  { %1794 = vsyncpa [#allocation4], 1 }
 0x30f   :  { %1796 = vsyncpa [#allocation4 + $0x1], 1 }
 0x310   :  { %1797 = vsyncpa [#allocation7], 1 }
 0x311   :  { %1798 = vsyncpa [#allocation5], 1 }
 0x312   :  { %1800 = vsyncpa [#allocation5 + $0x1], 1 }

</bundles_post_ra>
